<compile_context>
chip_gen: v7x
topology: tpu7x:2x2x1
jax: 0.10.0
libtpu: 0.0.40
codegen_flags: <defaults>
</compile_context>

<pallas_src>
import jax
import jax.numpy as jnp
from jax.experimental import pallas as pl
from jax.experimental.pallas import tpu as pltpu


def membrane_kernel(x_ref, r_ref, o_ref):
    # x_ref: (tile_r, 128*T)  -- each row = 128 pixels x T steps (step fastest)
    # r_ref: (128*T, 128)     -- block-diagonal coef reduction matrix
    # o_ref: (tile_r, 128)    -- per-pixel weighted sum over T (lane-dense)
    o_ref[...] = jnp.dot(
        x_ref[...], r_ref[...], preferred_element_type=jnp.float32
    ).astype(o_ref.dtype)


def membrane_output_layer(x, coef, *, tile_r=1024):
    """x: (N, C, H, W, T); coef: (T,). Returns (N, C, H, W)."""
    N, C, H, W, T = x.shape
    M = N * C * H * W
    L = 128 * T
    dtype = x.dtype
    itemsize = jnp.dtype(dtype).itemsize

    # Natural contiguous layout: flatten (free), no strided HBM relayout.
    x_flat = x.reshape(-1)                      # (M*T,), pixel-major, step fastest
    n_rows = pl.cdiv(M, 128)                    # rows of 128 pixels
    padded_pixels = n_rows * 128
    if padded_pixels != M:
        # Ragged pixel count: zero-pad the tail (zeros contribute nothing).
        x_flat = jnp.pad(x_flat, (0, (padded_pixels - M) * T))
    x2d = x_flat.reshape(n_rows, L)             # contiguous (n_rows, 128*T)

    # Block-diagonal reduction matrix: R[p*T + t, p] = coef[t], else 0.
    red = jnp.kron(
        jnp.eye(128, dtype=jnp.float32),
        coef.reshape(T, 1).astype(jnp.float32),
    ).astype(dtype)                             # (128*T, 128)

    # Tile sizing: ~4 MiB input block per buffer (Pallas double-buffers it),
    # well under scoped VMEM on v5e (16 MiB) / v6e / v7x (32 MiB default).
    max_block_bytes = 4 * 1024 * 1024
    cap = max(8, (max_block_bytes // (L * itemsize)) // 8 * 8)
    tile_r = max(8, min(int(tile_r) // 8 * 8, cap))
    # v7x has 2 TensorCores: prefer >=8 grid blocks when the problem is large
    # enough, without dropping below 128 rows (~0.5 MiB) per block.
    min_tile_r = 128
    if n_rows >= 8 * min_tile_r:
        tile_r = min(tile_r, max(min_tile_r, (n_rows // 8) // 8 * 8))
    tile_r = min(tile_r, n_rows)                # small inputs: single full block

    grid = (pl.cdiv(n_rows, tile_r),)

    cost = pl.CostEstimate(
        flops=2 * M * T,
        transcendentals=0,
        bytes_accessed=M * T * itemsize + M * itemsize + L * 128 * itemsize,
    )

    out = pl.pallas_call(
        membrane_kernel,
        out_shape=jax.ShapeDtypeStruct((n_rows, 128), dtype),
        grid_spec=pltpu.PrefetchScalarGridSpec(
            num_scalar_prefetch=0,
            grid=grid,
            in_specs=[
                pl.BlockSpec((tile_r, L), lambda i: (i, 0)),
                pl.BlockSpec((L, 128), lambda i: (0, 0)),
            ],
            out_specs=pl.BlockSpec((tile_r, 128), lambda i: (i, 0)),
        ),
        compiler_params=pltpu.CompilerParams(
            dimension_semantics=("parallel",),
            vmem_limit_bytes=32 * 1024 * 1024,
        ),
        cost_estimate=cost,
    )(x2d, red)

    return out.reshape(-1)[:M].reshape(N, C, H, W)


if __name__ == "__main__":
    # Deterministic parameter setup (module buffer): coef = 0.8 ** [T-1, ..., 0]
    n_steps = 8
    arr = jnp.arange(n_steps - 1, -1, -1, dtype=jnp.float32)
    coef = jnp.power(0.8, arr)                  # (T,)

    # Small example input consistent with forward: (N, C, H, W, T)
    key = jax.random.PRNGKey(0)
    N, C, H, W, T = 2, 4, 16, 16, n_steps
    x = jax.random.normal(key, (N, C, H, W, T), dtype=jnp.float32)

    out = membrane_output_layer(x, coef)
    out = jax.block_until_ready(out)

    # Reference (plain JAX) check of the PyTorch semantics.
    ref = jnp.sum(x * coef[None, None, None, None, :], axis=-1)
    assert out.shape == (N, C, H, W)
    assert jnp.allclose(out, ref, atol=1e-5, rtol=1e-5), "mismatch vs reference"

    print("KERNEL_OK")
</pallas_src>

<mosaic_0001>
module attributes {stable_mosaic.version = 11 : i64} {
  func.func @membrane_kernel(%arg0: i32, %arg1: memref<16x1024xf32, #tpu.memory_space<vmem>>, %arg2: memref<1024x128xf32, #tpu.memory_space<vmem>>, %arg3: memref<16x128xf32, #tpu.memory_space<vmem>>) attributes {dimension_semantics = [#tpu.dimension_semantics<parallel>], iteration_bounds = array<i64: 1>, scalar_prefetch = 0 : i64, scratch_operands = 0 : i64, tpu.core_type = #tpu.core_type<tc>, window_params = [{transform_indices = @transform_0, window_bounds = array<i64: 16, 1024>}, {pipeline_mode = #tpu.pipeline_mode<synchronous>, transform_indices = @transform_1, window_bounds = array<i64: 1024, 128>}, {transform_indices = @transform_2, window_bounds = array<i64: 16, 128>}]} {
    %c0 = arith.constant 0 : index
    %c0_0 = arith.constant 0 : index
    %0 = vector.load %arg1[%c0, %c0_0] : memref<16x1024xf32, #tpu.memory_space<vmem>>, vector<16x1024xf32>
    %c0_1 = arith.constant 0 : index
    %c0_2 = arith.constant 0 : index
    %1 = vector.load %arg2[%c0_1, %c0_2] : memref<1024x128xf32, #tpu.memory_space<vmem>>, vector<1024x128xf32>
    %cst = arith.constant dense<0.000000e+00> : vector<16x128xf32>
    %2 = tpu.matmul %0, %1, %cst {dimension_numbers = #tpu.dot_dimension_numbers<[1], [0], [0], [1], [0, 0, 1, 1], [], []>} : vector<16x1024xf32>, vector<1024x128xf32>, vector<16x128xf32> -> vector<16x128xf32>
    %c0_3 = arith.constant 0 : index
    %c0_4 = arith.constant 0 : index
    %3 = vector.load %arg3[%c0_3, %c0_4] : memref<16x128xf32, #tpu.memory_space<vmem>>, vector<16x128xf32>
    tpu.vector_store %arg3[%c0_3, %c0_4], %2 {strides = array<i32>} : memref<16x128xf32, #tpu.memory_space<vmem>>, vector<16x128xf32>,
    return
  }
  func.func @transform_0(%arg0: i32) -> (i32, i32) {
    %c0_i32 = arith.constant 0 : i32
    %c0_i32_0 = arith.constant 0 : i32
    return %arg0, %c0_i32 : i32, i32
  }
  func.func @transform_1(%arg0: i32) -> (i32, i32) {
    %c0_i32 = arith.constant 0 : i32
    %c0_i32_0 = arith.constant 0 : i32
    %c0_i32_1 = arith.constant 0 : i32
    return %c0_i32, %c0_i32_0 : i32, i32
  }
  func.func @transform_2(%arg0: i32) -> (i32, i32) {
    %c0_i32 = arith.constant 0 : i32
    %c0_i32_0 = arith.constant 0 : i32
    return %arg0, %c0_i32 : i32, i32
  }
}

</mosaic_0001>

<bundles_post_ra>
// kernel: tpu_custom_call.1
= control target key start
LH: loop header
LB: loop body
LE: loop exit
PB: predicated region body
PF: predicated region fallthrough
CT: control target
= control target key end

     0   :  { %7 = vsyncpa [#allocation3], 0  ;;  %s927_s0 = inlined_call_operand.hbm [shape: f32[16,1024], index: 0, kind: input, shape index: {}]   ;;  %s928_s1 = inlined_call_operand.hbm [shape: f32[1024,128], index: 1, kind: input, shape index: {}]   ;;  %s929_s2 = inlined_call_operand.hbm [shape: f32[16,128], index: 2, kind: output, shape index: {}]  }
   0x1   :  { %8 = vsyncpa [#allocation6], 0 }
   0x2   :  { %9 = vsyncpa [#allocation4], 0  ;;  %s863_s9 = smov [#allocation2]   ;;  %s791_s13 = scalar_lea.hbm %s927_s0, 2048 }
   0x3   :  { %s15_s10 = sshll.u32 %s863_s9, 4  ;;  %p792_p0 = scmp.ne.s32.totalorder %s927_s0, %s791_s13  ;;  %s16_s10 = int_to_ptr.vmem [resolvable:$true] %s15_s10 }
   0x4   :  { %p795_p1 = scmp.lt.u32.totalorder %s791_s13, %s927_s0 }
   0x6   :  { %p797_p2 = pnand %p795_p1, %p792_p0 }
   0x8   :  { %800 = shalt.err (!%p797_p2)
}
   0x9   :  { %s801_s18 = scalar_lea.vmem %s16_s10, 2048  ;;  %p806_p4 = scmp.lt.s32.totalorder %s16_s10, %s16_s10 }
   0xa   :  { %p802_p3 = scmp.ne.s32.totalorder %s16_s10, %s801_s18  ;;  %p807_p5 = scmp.lt.s32.totalorder %s801_s18, %s801_s18 }
   0xc   :  { %p808_p6 = por %p807_p5, %p806_p4 }
   0xe   :  { %p809_p7 = pnand %p808_p6, %p802_p3 }
  0x10   :  { %812 = shalt.err (!%p809_p7)
}
  0x11   :  { %s864_s19 = smov 1024   ;;  %s865_s20 = smov 64  }
  0x12   :  { %21 = dma.hbm_to_vmem [thread:$0]  %s927_s0, 2048, %s16_s10, [#allocation3], %s864_s19, %s864_s19, %s865_s20  }
  0x13   :  { %s866_s23 = smov [#allocation5]   ;;  %s813_s27 = scalar_lea.hbm %s928_s1, 16384 }
  0x14   :  { %s27_s24 = sshll.u32 %s866_s23, 4  ;;  %p814_p8 = scmp.ne.s32.totalorder %s928_s1, %s813_s27  ;;  %s28_s24 = int_to_ptr.vmem [resolvable:$true] %s27_s24 }
  0x15   :  { %p817_p9 = scmp.lt.u32.totalorder %s813_s27, %s928_s1 }
  0x17   :  { %p819_p10 = pnand %p817_p9, %p814_p8 }
  0x19   :  { %822 = shalt.err (!%p819_p10)
}
  0x1a   :  { %s823_s4 = scalar_lea.vmem %s28_s24, 16384  ;;  %p828_p12 = scmp.lt.s32.totalorder %s28_s24, %s28_s24 }
  0x1b   :  { %p824_p11 = scmp.ne.s32.totalorder %s28_s24, %s823_s4  ;;  %p829_p13 = scmp.lt.s32.totalorder %s823_s4, %s823_s4 }
  0x1d   :  { %p830_p0 = por %p829_p13, %p828_p12 }
  0x1f   :  { %p831_p1 = pnand %p830_p0, %p824_p11 }
  0x21   :  { %834 = shalt.err (!%p831_p1)
}
  0x22   :  { %s867_s0 = smov 128   ;;  %s868_s5 = smov 8  }
  0x23   :  { %33 = dma.hbm_to_vmem [thread:$0]  %s928_s1, 16384, %s28_s24, [#allocation6], %s867_s0, %s867_s0, %s868_s5  }
  0x24   :  { %857 = dma.done.wait [#allocation3], 2048  }
  0x25   :  { %858 = vsyncadd [#allocation3], 4294965248 }
  0x26   :  { %859 = dma.done.wait [#allocation6], 16384  }
  0x27   :  { %860 = vsyncadd [#allocation6], 4294950912  ;;  %v72_v0 = vld [vmem:[#allocation5 + $0x80] sm:$0xff]  ;;  %v73_v1 = vld [vmem:[#allocation5 + $0x88] sm:$0xff]  ;;  %s869_s1 = smov [#allocation7]  }
  0x28   :  { %v104_v2 = vld [vmem:[#allocation5 + $0x180] sm:$0xff]  ;;  %v656_v3 = vpack.c.bf16 %v73_v1, %v72_v0  ;;  %v105_v4 = vld [vmem:[#allocation5 + $0x188] sm:$0xff]  ;;  %v74_v11 = vld [vmem:[#allocation5 + $0x90] sm:$0xff]  ;;  %s491_s8 = sshll.u32 %s869_s1, 4  ;;  %s492_s8 = int_to_ptr.vmem [resolvable:$true] %s491_s8 }
  0x29   :  { %v56_v5 = vld [vmem:[#allocation5] sm:$0xff]  ;;  %v57_v6 = vld [vmem:[#allocation5 + $0x8] sm:$0xff]  ;;  %v688_v7 = vpack.c.bf16 %v105_v4, %v104_v2  ;;  %v75_v13 = vld [vmem:[#allocation5 + $0x98] sm:$0xff]  ;;  %s835_s9 = scalar_lea.vmem %s492_s8, 256  ;;  %p840_p3 = scmp.lt.s32.totalorder %s492_s8, %s492_s8 }
  0x2a   :  { %v658_v8 = vpack.c.bf16 %v57_v6, %v56_v5  ;;  %v88_v9 = vld [vmem:[#allocation5 + $0x100] sm:$0xff]  ;;  %v89_v10 = vld [vmem:[#allocation5 + $0x108] sm:$0xff]  ;;  %657 = vmatprep.subr.bf16.mxu0 %v656_v3  ;;  %v106_v14 = vld [vmem:[#allocation5 + $0x190] sm:$0xff]  ;;  %v660_v16 = vpack.c.bf16 %v75_v13, %v74_v11  ;;  %p836_p2 = scmp.ne.s32.totalorder %s492_s8, %s835_s9  ;;  %p841_p4 = scmp.lt.s32.totalorder %s835_s9, %s835_s9 }
  0x2b   :  { %v690_v12 = vpack.c.bf16 %v89_v10, %v88_v9  ;;  %v107_v15 = vld [vmem:[#allocation5 + $0x198] sm:$0xff]  ;;  %689 = vmatprep.subr.bf16.mxu1 %v688_v7  ;;  %v58_v18 = vld [vmem:[#allocation5 + $0x10] sm:$0xff]  ;;  %v76_v23 = vld [vmem:[#allocation5 + $0xa0] sm:$0xff] }
  0x2c   :  { %659 = vmatpush3.bf16.msra.mxu0 %v658_v8  ;;  %v692_v17 = vpack.c.bf16 %v107_v15, %v106_v14  ;;  %v59_v19 = vld [vmem:[#allocation5 + $0x18] sm:$0xff]  ;;  %v90_v20 = vld [vmem:[#allocation5 + $0x110] sm:$0xff]  ;;  %v77_v24 = vld [vmem:[#allocation5 + $0xa8] sm:$0xff]  ;;  %p842_p5 = por %p841_p4, %p840_p3 }
  0x2d   :  { %691 = vmatpush3.bf16.msra.mxu1 %v690_v12  ;;  %v662_v21 = vpack.c.bf16 %v59_v19, %v58_v18  ;;  %v91_v22 = vld [vmem:[#allocation5 + $0x118] sm:$0xff]  ;;  %661 = vmatprep.subr.bf16.mxu0 %v660_v16  ;;  %v664_v26 = vpack.c.bf16 %v77_v24, %v76_v23  ;;  %v108_v27 = vld [vmem:[#allocation5 + $0x1a0] sm:$0xff]  ;;  %v109_v28 = vld [vmem:[#allocation5 + $0x1a8] sm:$0xff] }
  0x2e   :  { %693 = vmatprep.subr.bf16.mxu1 %v692_v17  ;;  %v694_v25 = vpack.c.bf16 %v91_v22, %v90_v20  ;;  %v60_v29 = vld [vmem:[#allocation5 + $0x20] sm:$0xff]  ;;  %v696_v30 = vpack.c.bf16 %v109_v28, %v108_v27  ;;  %v61_v31 = vld [vmem:[#allocation5 + $0x28] sm:$0xff]  ;;  %v78_v35 = vld [vmem:[#allocation5 + $0xb0] sm:$0xff]  ;;  %p843_p6 = pnand %p842_p5, %p836_p2 }
  0x2f   :  { %v92_v32 = vld [vmem:[#allocation5 + $0x120] sm:$0xff]  ;;  %v93_v33 = vld [vmem:[#allocation5 + $0x128] sm:$0xff]  ;;  %v666_v34 = vpack.c.bf16 %v61_v31, %v60_v29  ;;  %v79_v36 = vld [vmem:[#allocation5 + $0xb8] sm:$0xff] }
  0x30   :  { %663 = vmatpush3.bf16.msra.mxu0 %v662_v21  ;;  %v110_v37 = vld [vmem:[#allocation5 + $0x1b0] sm:$0xff]  ;;  %v698_v38 = vpack.c.bf16 %v93_v33, %v92_v32  ;;  %v668_v39 = vpack.c.bf16 %v79_v36, %v78_v35  ;;  %v111_v40 = vld [vmem:[#allocation5 + $0x1b8] sm:$0xff]  ;;  %v80_v46 = vld [vmem:[#allocation5 + $0xc0] sm:$0xff] }
  0x31   :  { %695 = vmatpush3.bf16.msra.mxu1 %v694_v25  ;;  %665 = vmatprep.subr.bf16.mxu0 %v664_v26  ;;  %v62_v41 = vld [vmem:[#allocation5 + $0x30] sm:$0xff]  ;;  %v63_v42 = vld [vmem:[#allocation5 + $0x38] sm:$0xff]  ;;  %v700_v43 = vpack.c.bf16 %v111_v40, %v110_v37  ;;  %v81_v47 = vld [vmem:[#allocation5 + $0xc8] sm:$0xff] }
  0x32   :  { %697 = vmatprep.subr.bf16.mxu1 %v696_v30  ;;  %v94_v44 = vld [vmem:[#allocation5 + $0x130] sm:$0xff]  ;;  %v95_v45 = vld [vmem:[#allocation5 + $0x138] sm:$0xff]  ;;  %v112_v48 = vld [vmem:[#allocation5 + $0x1c0] sm:$0xff]  ;;  %v670_v50 = vpack.c.bf16 %v63_v42, %v62_v41  ;;  %v672_v52 = vpack.c.bf16 %v81_v47, %v80_v46 }
  0x33   :  { %v113_v49 = vld [vmem:[#allocation5 + $0x1c8] sm:$0xff]  ;;  %v702_v51 = vpack.c.bf16 %v95_v45, %v94_v44  ;;  %v64_v53 = vld [vmem:[#allocation5 + $0x40] sm:$0xff]  ;;  %v82_v58 = vld [vmem:[#allocation5 + $0xd0] sm:$0xff] }
  0x34   :  { %667 = vmatpush3.bf16.msra.mxu0 %v666_v34  ;;  %v65_v54 = vld [vmem:[#allocation5 + $0x48] sm:$0xff]  ;;  %v96_v55 = vld [vmem:[#allocation5 + $0x140] sm:$0xff]  ;;  %v704_v56 = vpack.c.bf16 %v113_v49, %v112_v48  ;;  %v83_v59 = vld [vmem:[#allocation5 + $0xd8] sm:$0xff] }
  0x35   :  { %699 = vmatpush3.bf16.msra.mxu1 %v698_v38  ;;  %669 = vmatprep.subr.bf16.mxu0 %v668_v39  ;;  %v97_v57 = vld [vmem:[#allocation5 + $0x148] sm:$0xff]  ;;  %v114_v60 = vld [vmem:[#allocation5 + $0x1d0] sm:$0xff]  ;;  %v115_v61 = vld [vmem:[#allocation5 + $0x1d8] sm:$0xff]  ;;  %v674_v62 = vpack.c.bf16 %v65_v54, %v64_v53  ;;  %v676_v0 = vpack.c.bf16 %v83_v59, %v82_v58 }
  0x36   :  { %701 = vmatprep.subr.bf16.mxu1 %v700_v43  ;;  %v706_v63 = vpack.c.bf16 %v97_v57, %v96_v55  ;;  %v66_v1 = vld [vmem:[#allocation5 + $0x50] sm:$0xff]  ;;  %v67_v2 = vld [vmem:[#allocation5 + $0x58] sm:$0xff]  ;;  %v708_v4 = vpack.c.bf16 %v115_v61, %v114_v60  ;;  %v84_v6 = vld [vmem:[#allocation5 + $0xe0] sm:$0xff] }
  0x37   :  { %v98_v3 = vld [vmem:[#allocation5 + $0x150] sm:$0xff]  ;;  %v99_v5 = vld [vmem:[#allocation5 + $0x158] sm:$0xff]  ;;  %v85_v7 = vld [vmem:[#allocation5 + $0xe8] sm:$0xff]  ;;  %v678_v10 = vpack.c.bf16 %v67_v2, %v66_v1 }
  0x38   :  { %671 = vmatpush3.bf16.msra.mxu0 %v670_v50  ;;  %v116_v8 = vld [vmem:[#allocation5 + $0x1e0] sm:$0xff]  ;;  %v117_v9 = vld [vmem:[#allocation5 + $0x1e8] sm:$0xff]  ;;  %v710_v13 = vpack.c.bf16 %v99_v5, %v98_v3  ;;  %v680_v14 = vpack.c.bf16 %v85_v7, %v84_v6  ;;  %v43_v17 = vld [vmem:[#allocation2 + $0x18] sm:$0xff] }
  0x39   :  { %703 = vmatpush3.bf16.msra.mxu1 %v702_v51  ;;  %673 = vmatprep.subr.bf16.mxu0 %v672_v52  ;;  %v68_v11 = vld [vmem:[#allocation5 + $0x60] sm:$0xff]  ;;  %v69_v12 = vld [vmem:[#allocation5 + $0x68] sm:$0xff]  ;;  %v712_v18 = vpack.c.bf16 %v117_v9, %v116_v8  ;;  %v86_v20 = vld [vmem:[#allocation5 + $0xf0] sm:$0xff] }
  0x3a   :  { %705 = vmatprep.subr.bf16.mxu1 %v704_v56  ;;  %v100_v15 = vld [vmem:[#allocation5 + $0x160] sm:$0xff]  ;;  %v41_v16 = vld [vmem:[#allocation2 + $0x8] sm:$0xff]  ;;  %v87_v21 = vld [vmem:[#allocation5 + $0xf8] sm:$0xff]  ;;  %323 = vmatprep.mubr.f32.mxu1 %v43_v17  ;;  %v682_v24 = vpack.c.bf16 %v69_v12, %v68_v11 }
  0x3b   :  { %v101_v19 = vld [vmem:[#allocation5 + $0x168] sm:$0xff]  ;;  %248 = vmatprep.mubr.f32.mxu0 %v41_v16  ;;  %v118_v22 = vld [vmem:[#allocation5 + $0x1f0] sm:$0xff]  ;;  %v119_v23 = vld [vmem:[#allocation5 + $0x1f8] sm:$0xff]  ;;  %v684_v26 = vpack.c.bf16 %v87_v21, %v86_v20 }
  0x3c   :  { %675 = vmatpush3.bf16.msra.mxu0 %v674_v62  ;;  %v714_v25 = vpack.c.bf16 %v101_v19, %v100_v15  ;;  %v70_v27 = vld [vmem:[#allocation5 + $0x70] sm:$0xff]  ;;  %v71_v28 = vld [vmem:[#allocation5 + $0x78] sm:$0xff]  ;;  %v716_v30 = vpack.c.bf16 %v119_v23, %v118_v22  ;;  %v136_v32 = vld [vmem:[#allocation5 + $0x280] sm:$0xff] }
  0x3d   :  { %707 = vmatpush3.bf16.msra.mxu1 %v706_v63  ;;  %677 = vmatprep.subr.bf16.mxu0 %v676_v0  ;;  %v102_v29 = vld [vmem:[#allocation5 + $0x170] sm:$0xff]  ;;  %v103_v31 = vld [vmem:[#allocation5 + $0x178] sm:$0xff]  ;;  %v137_v33 = vld [vmem:[#allocation5 + $0x288] sm:$0xff]  ;;  %v686_v36 = vpack.c.bf16 %v71_v28, %v70_v27 }
  0x3e   :  { %709 = vmatprep.subr.bf16.mxu1 %v708_v4  ;;  %v168_v34 = vld [vmem:[#allocation5 + $0x380] sm:$0xff]  ;;  %v169_v35 = vld [vmem:[#allocation5 + $0x388] sm:$0xff]  ;;  %v718_v37 = vpack.c.bf16 %v103_v31, %v102_v29  ;;  %v720_v38 = vpack.c.bf16 %v137_v33, %v136_v32  ;;  %v138_v44 = vld [vmem:[#allocation5 + $0x290] sm:$0xff] }
  0x3f   :  { %v120_v39 = vld [vmem:[#allocation5 + $0x200] sm:$0xff]  ;;  %v121_v40 = vld [vmem:[#allocation5 + $0x208] sm:$0xff]  ;;  %v752_v42 = vpack.c.bf16 %v169_v35, %v168_v34  ;;  %v139_v45 = vld [vmem:[#allocation5 + $0x298] sm:$0xff] }
  0x40   :  { %679 = vmatpush3.bf16.msra.mxu0 %v678_v10  ;;  %v152_v41 = vld [vmem:[#allocation5 + $0x300] sm:$0xff]  ;;  %v153_v43 = vld [vmem:[#allocation5 + $0x308] sm:$0xff]  ;;  %v170_v46 = vld [vmem:[#allocation5 + $0x390] sm:$0xff]  ;;  %v722_v50 = vpack.c.bf16 %v121_v40, %v120_v39  ;;  %v724_v52 = vpack.c.bf16 %v139_v45, %v138_v44 }
  0x41   :  { %711 = vmatpush3.bf16.msra.mxu1 %v710_v13  ;;  %681 = vmatprep.subr.bf16.mxu0 %v680_v14  ;;  %v171_v47 = vld [vmem:[#allocation5 + $0x398] sm:$0xff]  ;;  %v40_v48 = vld [vmem:[#allocation2] sm:$0xff]  ;;  %v42_v49 = vld [vmem:[#allocation2 + $0x10] sm:$0xff]  ;;  %v754_v51 = vpack.c.bf16 %v153_v43, %v152_v41 }
  0x42   :  { %713 = vmatprep.subr.bf16.mxu1 %v712_v18  ;;  %v122_v53 = vld [vmem:[#allocation5 + $0x210] sm:$0xff]  ;;  %v123_v54 = vld [vmem:[#allocation5 + $0x218] sm:$0xff]  ;;  %v756_v56 = vpack.c.bf16 %v171_v47, %v170_v46  ;;  %v140_v58 = vld [vmem:[#allocation5 + $0x2a0] sm:$0xff] }
  0x43   :  { %v154_v55 = vld [vmem:[#allocation5 + $0x310] sm:$0xff]  ;;  %v155_v57 = vld [vmem:[#allocation5 + $0x318] sm:$0xff]  ;;  %v141_v59 = vld [vmem:[#allocation5 + $0x2a8] sm:$0xff]  ;;  %v726_v62 = vpack.c.bf16 %v123_v54, %v122_v53 }
  0x44   :  { %683 = vmatpush3.bf16.msra.mxu0 %v682_v24  ;;  %v172_v60 = vld [vmem:[#allocation5 + $0x3a0] sm:$0xff]  ;;  %v173_v61 = vld [vmem:[#allocation5 + $0x3a8] sm:$0xff]  ;;  %v758_v63 = vpack.c.bf16 %v155_v57, %v154_v55  ;;  %v728_v0 = vpack.c.bf16 %v141_v59, %v140_v58  ;;  %v142_v6 = vld [vmem:[#allocation5 + $0x2b0] sm:$0xff] }
  0x45   :  { %715 = vmatpush3.bf16.msra.mxu1 %v714_v25  ;;  %685 = vmatprep.subr.bf16.mxu0 %v684_v26  ;;  %v124_v1 = vld [vmem:[#allocation5 + $0x220] sm:$0xff]  ;;  %v125_v2 = vld [vmem:[#allocation5 + $0x228] sm:$0xff]  ;;  %v760_v4 = vpack.c.bf16 %v173_v61, %v172_v60  ;;  %v143_v7 = vld [vmem:[#allocation5 + $0x2b8] sm:$0xff] }
  0x46   :  { %717 = vmatprep.subr.bf16.mxu1 %v716_v30  ;;  %v156_v3 = vld [vmem:[#allocation5 + $0x320] sm:$0xff]  ;;  %v157_v5 = vld [vmem:[#allocation5 + $0x328] sm:$0xff]  ;;  %v126_v8 = vld [vmem:[#allocation5 + $0x230] sm:$0xff]  ;;  %v730_v11 = vpack.c.bf16 %v125_v2, %v124_v1  ;;  %v732_v16 = vpack.c.bf16 %v143_v7, %v142_v6 }
  0x47   :  { %v174_v9 = vld [vmem:[#allocation5 + $0x3b0] sm:$0xff]  ;;  %v175_v10 = vld [vmem:[#allocation5 + $0x3b8] sm:$0xff]  ;;  %v49_v14 = vld [vmem:[#allocation2 + $0x48] sm:$0xff]  ;;  %v762_v15 = vpack.c.bf16 %v157_v5, %v156_v3 }
  0x48   :  { %687 = vmatpush3.bf16.msra.mxu0 %v686_v36  ;;  %v127_v12 = vld [vmem:[#allocation5 + $0x238] sm:$0xff]  ;;  %v158_v13 = vld [vmem:[#allocation5 + $0x330] sm:$0xff]  ;;  %v144_v18 = vld [vmem:[#allocation5 + $0x2c0] sm:$0xff]  ;;  %v764_v20 = vpack.c.bf16 %v175_v10, %v174_v9 }
  0x49   :  { %719 = vmatpush3.bf16.msra.mxu1 %v718_v37  ;;  %721 = vmatprep.subr.bf16.mxu0 %v720_v38  ;;  %v159_v17 = vld [vmem:[#allocation5 + $0x338] sm:$0xff]  ;;  %v145_v21 = vld [vmem:[#allocation5 + $0x2c8] sm:$0xff]  ;;  %v48_v22 = vld [vmem:[#allocation2 + $0x40] sm:$0xff]  ;;  %v734_v26 = vpack.c.bf16 %v127_v12, %v126_v8 }
  0x4a   :  { %753 = vmatprep.subr.bf16.mxu1 %v752_v42  ;;  %v51_v19 = vld [vmem:[#allocation2 + $0x58] sm:$0xff]  ;;  %v50_v23 = vld [vmem:[#allocation2 + $0x50] sm:$0xff]  ;;  %v176_v24 = vld [vmem:[#allocation5 + $0x3c0] sm:$0xff]  ;;  %v766_v29 = vpack.c.bf16 %v159_v17, %v158_v13  ;;  %v736_v30 = vpack.c.bf16 %v145_v21, %v144_v18 }
  0x4b   :  { %249 = vmatmul.mubr.f32.vlgmr.msra.gmra.mrb[0].mxu0 %v40_v48  ;;  %v177_v25 = vld [vmem:[#allocation5 + $0x3c8] sm:$0xff]  ;;  %v128_v27 = vld [vmem:[#allocation5 + $0x240] sm:$0xff]  ;;  %v146_v35 = vld [vmem:[#allocation5 + $0x2d0] sm:$0xff] }
  0x4c   :  { %324 = vmatmul.mubr.f32.vlgmr.msra.gmra.mrb[0].mxu1 %v42_v49  ;;  %723 = vmatpush3.bf16.msra.mxu0 %v722_v50  ;;  %v129_v28 = vld [vmem:[#allocation5 + $0x248] sm:$0xff]  ;;  %v160_v31 = vld [vmem:[#allocation5 + $0x340] sm:$0xff]  ;;  %v768_v34 = vpack.c.bf16 %v177_v25, %v176_v24  ;;  %v147_v36 = vld [vmem:[#allocation5 + $0x2d8] sm:$0xff] }
  0x4d   :  { %755 = vmatpush3.bf16.msra.mxu1 %v754_v51  ;;  %725 = vmatprep.subr.bf16.mxu0 %v724_v52  ;;  %v161_v32 = vld [vmem:[#allocation5 + $0x348] sm:$0xff]  ;;  %v47_v37 = vld [vmem:[#allocation2 + $0x38] sm:$0xff]  ;;  %v178_v38 = vld [vmem:[#allocation5 + $0x3d0] sm:$0xff]  ;;  %v738_v40 = vpack.c.bf16 %v129_v28, %v128_v27  ;;  %v740_v42 = vpack.c.bf16 %v147_v36, %v146_v35 }
  0x4e   :  { %757 = vmatprep.subr.bf16.mxu1 %v756_v56  ;;  %253 = vmatprep.mubr.f32.mxu0 %v49_v14  ;;  %v45_v33 = vld [vmem:[#allocation2 + $0x28] sm:$0xff]  ;;  %v179_v39 = vld [vmem:[#allocation5 + $0x3d8] sm:$0xff]  ;;  %v770_v41 = vpack.c.bf16 %v161_v32, %v160_v31  ;;  %v130_v43 = vld [vmem:[#allocation5 + $0x250] sm:$0xff] }
  0x4f   :  { %328 = vmatprep.mubr.f32.mxu1 %v51_v19  ;;  %254 = vmatmul.mubr.f32.gmra.mrb[2].mxu0 %v48_v22  ;;  %v131_v44 = vld [vmem:[#allocation5 + $0x258] sm:$0xff]  ;;  %v162_v45 = vld [vmem:[#allocation5 + $0x350] sm:$0xff]  ;;  %v772_v46 = vpack.c.bf16 %v179_v39, %v178_v38  ;;  %v148_v48 = vld [vmem:[#allocation5 + $0x2e0] sm:$0xff] }
  0x50   :  { %727 = vmatpush3.bf16.msra.mxu0 %v726_v62  ;;  %329 = vmatmul.mubr.f32.gmra.mrb[2].mxu1 %v50_v23  ;;  %v163_v47 = vld [vmem:[#allocation5 + $0x358] sm:$0xff]  ;;  %v149_v49 = vld [vmem:[#allocation5 + $0x2e8] sm:$0xff]  ;;  %v180_v50 = vld [vmem:[#allocation5 + $0x3e0] sm:$0xff]  ;;  %v742_v52 = vpack.c.bf16 %v131_v44, %v130_v43 }
  0x51   :  { %759 = vmatpush3.bf16.msra.mxu1 %v758_v63  ;;  %729 = vmatprep.subr.bf16.mxu0 %v728_v0  ;;  %v181_v51 = vld [vmem:[#allocation5 + $0x3e8] sm:$0xff]  ;;  %v774_v53 = vpack.c.bf16 %v163_v47, %v162_v45  ;;  %v744_v54 = vpack.c.bf16 %v149_v49, %v148_v48  ;;  %v132_v55 = vld [vmem:[#allocation5 + $0x260] sm:$0xff]  ;;  %v150_v60 = vld [vmem:[#allocation5 + $0x2f0] sm:$0xff] }
  0x52   :  { %761 = vmatprep.subr.bf16.mxu1 %v760_v4  ;;  %398 = vmatprep.mubr.f32.mxu0 %v45_v33  ;;  %v133_v56 = vld [vmem:[#allocation5 + $0x268] sm:$0xff]  ;;  %v164_v57 = vld [vmem:[#allocation5 + $0x360] sm:$0xff]  ;;  %v776_v58 = vpack.c.bf16 %v181_v51, %v180_v50  ;;  %v151_v61 = vld [vmem:[#allocation5 + $0x2f8] sm:$0xff] }
  0x53   :  { %473 = vmatprep.mubr.f32.mxu1 %v47_v37  ;;  %v165_v59 = vld [vmem:[#allocation5 + $0x368] sm:$0xff]  ;;  %v182_v62 = vld [vmem:[#allocation5 + $0x3f0] sm:$0xff]  ;;  %v183_v63 = vld [vmem:[#allocation5 + $0x3f8] sm:$0xff]  ;;  %v746_v0 = vpack.c.bf16 %v133_v56, %v132_v55  ;;  %v748_v2 = vpack.c.bf16 %v151_v61, %v150_v60 }
  0x54   :  { %731 = vmatpush3.bf16.msra.mxu0 %v730_v11  ;;  %v778_v1 = vpack.c.bf16 %v165_v59, %v164_v57  ;;  %v134_v3 = vld [vmem:[#allocation5 + $0x270] sm:$0xff]  ;;  %v135_v4 = vld [vmem:[#allocation5 + $0x278] sm:$0xff]  ;;  %v780_v5 = vpack.c.bf16 %v183_v63, %v182_v62  ;;  %v44_v10 = vld [vmem:[#allocation2 + $0x20] sm:$0xff] }
  0x55   :  { %763 = vmatpush3.bf16.msra.mxu1 %v762_v15  ;;  %733 = vmatprep.subr.bf16.mxu0 %v732_v16  ;;  %v166_v6 = vld [vmem:[#allocation5 + $0x370] sm:$0xff]  ;;  %v167_v7 = vld [vmem:[#allocation5 + $0x378] sm:$0xff]  ;;  %v750_v8 = vpack.c.bf16 %v135_v4, %v134_v3  ;;  %v53_v12 = vld [vmem:[#allocation2 + $0x68] sm:$0xff] }
  0x56   :  { %765 = vmatprep.subr.bf16.mxu1 %v764_v20  ;;  %v782_v9 = vpack.c.bf16 %v167_v7, %v166_v6  ;;  %v46_v11 = vld [vmem:[#allocation2 + $0x30] sm:$0xff]  ;;  %v55_v13 = vld [vmem:[#allocation2 + $0x78] sm:$0xff]  ;;  %v52_v14 = vld [vmem:[#allocation2 + $0x60] sm:$0xff] }
  0x57   :  { %v54_v15 = vld [vmem:[#allocation2 + $0x70] sm:$0xff] }
  0x58   :  { %735 = vmatpush3.bf16.msra.mxu0 %v734_v26 }
  0x59   :  { %767 = vmatpush3.bf16.msra.mxu1 %v766_v29  ;;  %737 = vmatprep.subr.bf16.mxu0 %v736_v30 }
  0x5a   :  { %769 = vmatprep.subr.bf16.mxu1 %v768_v34 }
  0x5c   :  { %739 = vmatpush3.bf16.msra.mxu0 %v738_v40 }
  0x5d   :  { %771 = vmatpush3.bf16.msra.mxu1 %v770_v41  ;;  %741 = vmatprep.subr.bf16.mxu0 %v740_v42 }
  0x5e   :  { %773 = vmatprep.subr.bf16.mxu1 %v772_v46 }
  0x60   :  { %743 = vmatpush3.bf16.msra.mxu0 %v742_v52 }
  0x61   :  { %775 = vmatpush3.bf16.msra.mxu1 %v774_v53  ;;  %745 = vmatprep.subr.bf16.mxu0 %v744_v54 }
  0x62   :  { %777 = vmatprep.subr.bf16.mxu1 %v776_v58 }
  0x64   :  { %747 = vmatpush3.bf16.msra.mxu0 %v746_v0 }
  0x65   :  { %779 = vmatpush3.bf16.msra.mxu1 %v778_v1  ;;  %749 = vmatprep.subr.bf16.mxu0 %v748_v2 }
  0x66   :  { %781 = vmatprep.subr.bf16.mxu1 %v780_v5 }
  0x68   :  { %751 = vmatpush3.bf16.msra.mxu0 %v750_v8 }
  0x69   :  { %783 = vmatpush3.bf16.msra.mxu1 %v782_v9 }
  0x6b   :  { %399 = vmatmul.mubr.f32.vlgmr.msra.gmra.mrb[4].mxu0 %v44_v10 }
  0x6c   :  { %474 = vmatmul.mubr.f32.vlgmr.msra.gmra.mrb[4].mxu1 %v46_v11  ;;  %403 = vmatprep.mubr.f32.mxu0 %v53_v12 }
  0x6d   :  { %478 = vmatprep.mubr.f32.mxu1 %v55_v13 }
  0x6f   :  { %404 = vmatmul.mubr.f32.gmra.mrb[6].mxu0 %v52_v14 }
  0x70   :  { %479 = vmatmul.mubr.f32.gmra.mrb[6].mxu1 %v54_v15 }
 0x11e   :  { %v536_v16 = vpop.f32.mrb[0].mxu0 }
 0x11f   :  { %v574_v17 = vpop.f32.mrb[0].mxu1  ;;  %v537_v18 = vpop.f32.mrb[1].mxu0 }
 0x120   :  { %v538_v19 = vadd.f32 %v537_v18, %v536_v16  ;;  %v575_v20 = vpop.f32.mrb[1].mxu1 }
 0x121   :  { %v576_v21 = vadd.f32 %v575_v20, %v574_v17 }
 0x122   :  { %v539_v23 = vpop.f32.mrb[2].mxu0 }
 0x123   :  { %v326_v22 = vadd.f32 %v576_v21, %v538_v19  ;;  %v577_v24 = vpop.f32.mrb[2].mxu1  ;;  %v540_v25 = vpop.f32.mrb[3].mxu0 }
 0x124   :  { %v541_v26 = vadd.f32 %v540_v25, %v539_v23  ;;  %v578_v27 = vpop.f32.mrb[3].mxu1 }
 0x125   :  { %v579_v28 = vadd.f32 %v578_v27, %v577_v24 }
 0x127   :  { %v331_v29 = vadd.f32 %v579_v28, %v541_v26 }
 0x13e   :  { %v612_v30 = vpop.f32.mrb[4].mxu0 }
 0x13f   :  { %v613_v31 = vpop.f32.mrb[5].mxu0  ;;  %v650_v32 = vpop.f32.mrb[4].mxu1 }
 0x140   :  { %v614_v33 = vadd.f32 %v613_v31, %v612_v30  ;;  %v651_v34 = vpop.f32.mrb[5].mxu1 }
 0x141   :  { %v652_v35 = vadd.f32 %v651_v34, %v650_v32 }
 0x142   :  { %v401_v36 = vadd.f32 %v614_v33, %v326_v22  ;;  %v615_v37 = vpop.f32.mrb[6].mxu0 }
 0x143   :  { %v616_v38 = vpop.f32.mrb[7].mxu0  ;;  %v653_v39 = vpop.f32.mrb[6].mxu1 }
 0x144   :  { %v476_v40 = vadd.f32 %v652_v35, %v401_v36  ;;  %v617_v41 = vadd.f32 %v616_v38, %v615_v37  ;;  %v654_v42 = vpop.f32.mrb[7].mxu1 }
 0x145   :  { %v655_v43 = vadd.f32 %v654_v42, %v653_v39 }
 0x146   :  { %484 = vst [vmem:[#allocation7] sm:$0xff] %v476_v40  ;;  %v406_v44 = vadd.f32 %v617_v41, %v331_v29 }
 0x148   :  { %v481_v45 = vadd.f32 %v655_v43, %v406_v44 }
 0x14a   :  { %485 = vst [vmem:[#allocation7 + $0x8] sm:$0xff] %v481_v45 }
 0x14b   :  { %846 = shalt.err (!%p843_p6)
}
 0x14c   :  { %s847_s12 = scalar_lea.hbm %s929_s2, 256 }
 0x14d   :  { %p848_p7 = scmp.ne.s32.totalorder %s929_s2, %s847_s12  ;;  %p851_p8 = scmp.lt.u32.totalorder %s847_s12, %s929_s2 }
 0x14f   :  { %p853_p9 = pnand %p851_p8, %p848_p7 }
 0x151   :  { %856 = shalt.err (!%p853_p9)
}
 0x152   :  { %497 = dma.vmem_to_hbm [thread:$0]  %s492_s8, 256, %s929_s2, [#allocation4], %s867_s0, %s867_s0, %s868_s5  }
 0x153   :  { %861 = dma.done.wait [#allocation4], 256  }
 0x154   :  { %862 = vsyncadd [#allocation4], 4294967040 }
 0x155   :  { %501 = vsyncpa [#allocation3], 1 }
 0x156   :  { %502 = vsyncpa [#allocation6], 1 }
 0x157   :  { %503 = vsyncpa [#allocation4], 1 }

</bundles_post_ra>
